<compile_context>
chip_gen: v5e
topology: v5e:2x2
jax: 0.10.0
libtpu: 0.0.40
codegen_flags: <defaults>
</compile_context>

<pallas_src>
import functools

import jax
import jax.numpy as jnp
from jax.experimental import pallas as pl
from jax.experimental.pallas import tpu as pltpu


def _res_conv2d_kernel(x_ref, wcat_ref, b1_ref, w2_ref, bc_ref, o_ref, *,
                       d_hidden, compute_dtype):
    # x_ref   : (b_blk, C_in, tile)        pixels on lanes, channels on sublanes
    # wcat_ref: (d_hidden + d_out, C_in)   [W1f ; Wsf]  (BN scales folded in)
    # b1_ref  : (d_hidden, 1)
    # w2_ref  : (d_out, d_hidden)          BN2 scale folded in
    # bc_ref  : (d_out, 1)                 merged shift (b2 + bs)
    # o_ref   : (b_blk, d_out, tile)
    wcat = wcat_ref[...]
    w2 = w2_ref[...]
    b1 = b1_ref[...]
    bc = bc_ref[...]
    b_blk = x_ref.shape[0]
    for bi in range(b_blk):  # static unroll (b_blk <= 16)
        x = x_ref[bi].astype(compute_dtype)                        # (C_in, tile)
        # Single MXU matmul feeds BOTH branches (they share RHS x).
        y = jnp.dot(wcat, x, preferred_element_type=jnp.float32)   # (dh+do, tile)
        h = jnp.maximum(y[:d_hidden] + b1, 0.0)                    # conv1+BN1+ReLU
        sc = y[d_hidden:]                                          # shortcut conv+BN
        main = jnp.dot(w2, h.astype(compute_dtype),
                       preferred_element_type=jnp.float32)         # conv2+BN2
        # TODO(synk): on v7x the two partial sums could accumulate in the MRB
        # instead of a VPU add; not expressible from Pallas today.
        o_ref[bi] = (main + sc + bc).astype(o_ref.dtype)


def _fold_bn(conv_bias, gamma, beta, mean, var, eps):
    """Fold conv bias + BatchNorm (inference) into per-channel scale & shift."""
    s = gamma / jnp.sqrt(var + eps)
    b = beta - mean * s + conv_bias * s
    return s, b


def _pick_tiles(B, HW, tn):
    """Lane-dense pixel tile + batch block so each grid step does ~tn pixels."""
    if HW <= 128:
        tile = HW                          # sub-128 only for tiny feature maps
    else:
        tile = max((min(tn, HW) // 128) * 128, 128)
    n_tiles = pl.cdiv(HW, tile)
    # Fold batch elements into each step until ~tn pixels/step (cap 16 to bound
    # the static unroll), but keep >= 2 grid steps for v7x megacore sharding.
    cap = max(1, min(tn // tile, 16))
    b_blk = 1
    for d in range(1, B + 1):
        if B % d == 0 and d <= cap:
            b_blk = d
    while b_blk > 1 and (B // b_blk) * n_tiles < 2:
        b_blk -= 1
        while B % b_blk:
            b_blk -= 1
    return tile, n_tiles, b_blk


@functools.partial(jax.jit, static_argnames=("tn", "compute_dtype", "out_dtype"))
def res_conv2d_block(x_nchw, params, tn=32768, eps=1e-5,
                     compute_dtype=jnp.bfloat16, out_dtype=None):
    """x_nchw: [B, d_in, H, W].  Returns [B, d_out, H, W] (out_dtype or x.dtype)."""
    (w1, b1c, g1, be1, m1, v1,
     w2, b2c, g2, be2, m2, v2,
     ws, bsc, gs, bes, ms, vs) = params

    B, C_in, H, W = x_nchw.shape
    d_hidden = w1.shape[0]
    d_out = w2.shape[0]
    HW = H * W
    out_dtype = x_nchw.dtype if out_dtype is None else out_dtype

    # --- glue: fold conv-bias + BN (inference stats) into scale/shift ----------
    # TODO(synk): d_in == d_out uses nn.Identity() for the shortcut in the module;
    # that case can be served by passing folded identity weights (Ws=I, shift=0).
    s1, b1 = _fold_bn(b1c, g1, be1, m1, v1, eps)
    s2, b2 = _fold_bn(b2c, g2, be2, m2, v2, eps)
    ss, bs = _fold_bn(bsc, gs, bes, ms, vs, eps)

    # W1 and Ws share RHS x: concatenate so the kernel does one MXU matmul for
    # both branches, then slices rows (d_hidden is 8-sublane aligned -> free).
    W1f = w1[:, :, 0, 0] * s1[:, None]                               # (d_hidden, C_in)
    Wsf = ws[:, :, 0, 0] * ss[:, None]                               # (d_out,    C_in)
    Wcat = jnp.concatenate([W1f, Wsf], axis=0).astype(compute_dtype)
    W2f = (w2[:, :, 0, 0] * s2[:, None]).astype(compute_dtype)       # (d_out, d_hidden)
    b1_col = b1.reshape(d_hidden, 1).astype(jnp.float32)
    bc_col = (b2 + bs).reshape(d_out, 1).astype(jnp.float32)         # merged shift

    # NCHW stays NCHW: merge contiguous spatial dims (free reshape).  The bf16
    # cast happens in-kernel so no extra HBM conversion pass is introduced.
    x3d = x_nchw.reshape(B, C_in, HW)

    tile, n_tiles, b_blk = _pick_tiles(B, HW, tn)

    pix = lambda bi, j: (bi, 0, j)        # walk batch blocks + pixel tiles
    rep = lambda bi, j: (0, 0)            # weights/biases: same block every step

    # VMEM budget: double-buffered x/out tiles + weights + in-kernel intermediates.
    x_b = x_nchw.dtype.itemsize
    o_b = jnp.dtype(out_dtype).itemsize
    c_b = jnp.dtype(compute_dtype).itemsize
    per_px = (2 * C_in * x_b + 2 * d_out * o_b                 # double-buffered I/O
              + C_in * c_b + (d_hidden + d_out) * 4            # x cast, y (f32)
              + d_hidden * c_b + d_out * 4)                    # h cast, main (f32)
    small = (d_hidden + d_out) * C_in + d_out * d_hidden + d_hidden + d_out
    vmem_bytes = b_blk * tile * per_px + 2 * 4 * small
    vmem_limit = int(min(max(1.25 * vmem_bytes, 32 * 1024 * 1024),
                         48 * 1024 * 1024))    # stay well under v7x's 64 MiB/TC

    kernel = functools.partial(_res_conv2d_kernel, d_hidden=d_hidden,
                               compute_dtype=compute_dtype)
    out3d = pl.pallas_call(
        kernel,
        out_shape=jax.ShapeDtypeStruct((B, d_out, HW), out_dtype),
        grid=(B // b_blk, n_tiles),
        in_specs=[
            pl.BlockSpec((b_blk, C_in, tile), pix),            # x tile (lane-dense)
            pl.BlockSpec((d_hidden + d_out, C_in), rep),       # [W1f ; Wsf]
            pl.BlockSpec((d_hidden, 1), rep),                  # b1
            pl.BlockSpec((d_out, d_hidden), rep),              # W2f
            pl.BlockSpec((d_out, 1), rep),                     # b2 + bs
        ],
        out_specs=pl.BlockSpec((b_blk, d_out, tile), pix),
        compiler_params=pltpu.CompilerParams(
            dimension_semantics=("parallel", "parallel"),
            vmem_limit_bytes=vmem_limit),
    )(x3d, Wcat, b1_col, W2f, bc_col)

    return out3d.reshape(B, d_out, H, W)


def init_params(key, d_in, d_hidden, d_out):
    ks = jax.random.split(key, 12)
    f = jnp.float32
    # main conv1
    w1 = 0.1 * jax.random.normal(ks[0], (d_hidden, d_in, 1, 1), f)
    b1 = 0.1 * jax.random.normal(ks[1], (d_hidden,), f)
    g1 = 1.0 + 0.05 * jax.random.normal(ks[2], (d_hidden,), f)
    be1 = 0.05 * jax.random.normal(ks[3], (d_hidden,), f)
    m1 = 0.05 * jax.random.normal(ks[4], (d_hidden,), f)
    v1 = 1.0 + 0.1 * jax.random.uniform(ks[5], (d_hidden,), f)
    # main conv2
    w2 = 0.1 * jax.random.normal(ks[6], (d_out, d_hidden, 1, 1), f)
    b2 = 0.1 * jax.random.normal(ks[7], (d_out,), f)
    g2 = 1.0 + 0.05 * jax.random.normal(ks[8], (d_out,), f)
    be2 = 0.05 * jax.random.normal(ks[9], (d_out,), f)
    m2 = 0.05 * jax.random.normal(ks[10], (d_out,), f)
    v2 = 1.0 + 0.1 * jax.random.uniform(ks[11], (d_out,), f)
    # shortcut conv (d_in != d_out case)
    ks2 = jax.random.split(ks[0], 6)
    ws = 0.1 * jax.random.normal(ks2[0], (d_out, d_in, 1, 1), f)
    bs = 0.1 * jax.random.normal(ks2[1], (d_out,), f)
    gs = 1.0 + 0.05 * jax.random.normal(ks2[2], (d_out,), f)
    bes = 0.05 * jax.random.normal(ks2[3], (d_out,), f)
    ms = 0.05 * jax.random.normal(ks2[4], (d_out,), f)
    vs = 1.0 + 0.1 * jax.random.uniform(ks2[5], (d_out,), f)
    return (w1, b1, g1, be1, m1, v1,
            w2, b2, g2, be2, m2, v2,
            ws, bs, gs, bes, ms, vs)


def _reference(x_nchw, params, eps=1e-5):
    """Plain-JAX f32 reference (PyTorch eval-mode semantics)."""
    (w1, b1c, g1, be1, m1, v1,
     w2, b2c, g2, be2, m2, v2,
     ws, bsc, gs, bes, ms, vs) = params
    s1, b1 = _fold_bn(b1c, g1, be1, m1, v1, eps)
    s2, b2 = _fold_bn(b2c, g2, be2, m2, v2, eps)
    ss, bs = _fold_bn(bsc, gs, bes, ms, vs, eps)
    x = jnp.transpose(x_nchw, (0, 2, 3, 1))                      # NHWC
    h = jnp.maximum(jnp.einsum("bhwc,oc->bhwo", x, w1[:, :, 0, 0]) * s1 + b1, 0.0)
    main = jnp.einsum("bhwc,oc->bhwo", h, w2[:, :, 0, 0]) * s2 + b2
    sc = jnp.einsum("bhwc,oc->bhwo", x, ws[:, :, 0, 0]) * ss + bs
    return jnp.transpose(main + sc, (0, 3, 1, 2))


if __name__ == "__main__":
    d_in, d_hidden, d_out = 4, 32, 8

    key = jax.random.PRNGKey(0)
    kx, kp, kx2 = jax.random.split(key, 3)
    params = init_params(kp, d_in, d_hidden, d_out)

    # main check: B=2, 16x16 feature map
    x = jax.random.normal(kx, (2, d_in, 16, 16), jnp.float32)
    out = jax.block_until_ready(res_conv2d_block(x, params))
    ref = _reference(x, params)
    assert out.shape == (2, d_out, 16, 16)
    # bf16 matmul operands (f32 accumulation / f32 output) -> loosened tolerance
    assert jnp.allclose(out, ref, atol=5e-2, rtol=5e-2), float(
        jnp.max(jnp.abs(out - ref)))

    # edge check: H*W not a multiple of 128 (masked final pixel tile)
    x2 = jax.random.normal(kx2, (2, d_in, 20, 20), jnp.float32)
    out2 = jax.block_until_ready(res_conv2d_block(x2, params))
    ref2 = _reference(x2, params)
    assert out2.shape == (2, d_out, 20, 20)
    assert jnp.allclose(out2, ref2, atol=5e-2, rtol=5e-2), float(
        jnp.max(jnp.abs(out2 - ref2)))

    print("KERNEL_OK")
</pallas_src>

<mosaic_0001>
module attributes {stable_mosaic.version = 11 : i64} {
  func.func @_res_conv2d_kernel(%arg0: i32, %arg1: i32, %arg2: memref<1x4x256xf32, #tpu.memory_space<vmem>>, %arg3: memref<40x4xbf16, #tpu.memory_space<vmem>>, %arg4: memref<32x1xf32, #tpu.memory_space<vmem>>, %arg5: memref<8x32xbf16, #tpu.memory_space<vmem>>, %arg6: memref<8x1xf32, #tpu.memory_space<vmem>>, %arg7: memref<1x8x256xf32, #tpu.memory_space<vmem>>) attributes {dimension_semantics = [#tpu.dimension_semantics<parallel>, #tpu.dimension_semantics<parallel>], iteration_bounds = array<i64: 2, 1>, scalar_prefetch = 0 : i64, scratch_operands = 0 : i64, tpu.core_type = #tpu.core_type<tc>, window_params = [{transform_indices = @transform_0, window_bounds = array<i64: 1, 4, 256>}, {pipeline_mode = #tpu.pipeline_mode<synchronous>, transform_indices = @transform_1, window_bounds = array<i64: 40, 4>}, {pipeline_mode = #tpu.pipeline_mode<synchronous>, transform_indices = @transform_2, window_bounds = array<i64: 32, 1>}, {pipeline_mode = #tpu.pipeline_mode<synchronous>, transform_indices = @transform_3, window_bounds = array<i64: 8, 32>}, {pipeline_mode = #tpu.pipeline_mode<synchronous>, transform_indices = @transform_4, window_bounds = array<i64: 8, 1>}, {transform_indices = @transform_5, window_bounds = array<i64: 1, 8, 256>}]} {
    %c0 = arith.constant 0 : index
    %c0_0 = arith.constant 0 : index
    %0 = vector.load %arg3[%c0, %c0_0] : memref<40x4xbf16, #tpu.memory_space<vmem>>, vector<40x4xbf16>
    %c0_1 = arith.constant 0 : index
    %c0_2 = arith.constant 0 : index
    %1 = vector.load %arg5[%c0_1, %c0_2] : memref<8x32xbf16, #tpu.memory_space<vmem>>, vector<8x32xbf16>
    %c0_3 = arith.constant 0 : index
    %c0_4 = arith.constant 0 : index
    %2 = vector.load %arg4[%c0_3, %c0_4] : memref<32x1xf32, #tpu.memory_space<vmem>>, vector<32x1xf32>
    %c0_5 = arith.constant 0 : index
    %c0_6 = arith.constant 0 : index
    %3 = vector.load %arg6[%c0_5, %c0_6] : memref<8x1xf32, #tpu.memory_space<vmem>>, vector<8x1xf32>
    %c0_7 = arith.constant 0 : index
    %c0_8 = arith.constant 0 : index
    %c0_9 = arith.constant 0 : index
    %4 = vector.load %arg2[%c0_7, %c0_8, %c0_9] : memref<1x4x256xf32, #tpu.memory_space<vmem>>, vector<1x4x256xf32>
    %5 = vector.shape_cast %4 : vector<1x4x256xf32> to vector<4x256xf32>
    %6 = arith.truncf %5 : vector<4x256xf32> to vector<4x256xbf16>
    %cst = arith.constant dense<0.000000e+00> : vector<40x256xf32>
    %7 = tpu.matmul %0, %6, %cst {dimension_numbers = #tpu.dot_dimension_numbers<[1], [0], [0], [1], [0, 0, 1, 1], [], []>} : vector<40x4xbf16>, vector<4x256xbf16>, vector<40x256xf32> -> vector<40x256xf32>
    %8 = vector.extract_strided_slice %7 {offsets = [0, 0], sizes = [32, 256], strides = [1, 1]} : vector<40x256xf32> to vector<32x256xf32>
    %9 = vector.broadcast %2 : vector<32x1xf32> to vector<32x256xf32>
    %10 = arith.addf %8, %9 : vector<32x256xf32>
    %cst_10 = arith.constant 0.000000e+00 : f32
    %11 = vector.broadcast %cst_10 : f32 to vector<32x256xf32>
    %12 = arith.maximumf %10, %11 : vector<32x256xf32>
    %13 = vector.extract_strided_slice %7 {offsets = [32, 0], sizes = [8, 256], strides = [1, 1]} : vector<40x256xf32> to vector<8x256xf32>
    %14 = arith.truncf %12 : vector<32x256xf32> to vector<32x256xbf16>
    %cst_11 = arith.constant dense<0.000000e+00> : vector<8x256xf32>
    %15 = tpu.matmul %1, %14, %cst_11 {dimension_numbers = #tpu.dot_dimension_numbers<[1], [0], [0], [1], [0, 0, 1, 1], [], []>} : vector<8x32xbf16>, vector<32x256xbf16>, vector<8x256xf32> -> vector<8x256xf32>
    %16 = arith.addf %15, %13 : vector<8x256xf32>
    %17 = vector.broadcast %3 : vector<8x1xf32> to vector<8x256xf32>
    %18 = arith.addf %16, %17 : vector<8x256xf32>
    %c0_12 = arith.constant 0 : index
    %c0_13 = arith.constant 0 : index
    %c0_14 = arith.constant 0 : index
    %19 = vector.load %arg7[%c0_12, %c0_13, %c0_14] : memref<1x8x256xf32, #tpu.memory_space<vmem>>, vector<1x8x256xf32>
    %20 = vector.shape_cast %19 : vector<1x8x256xf32> to vector<8x256xf32>
    %21 = vector.shape_cast %18 : vector<8x256xf32> to vector<1x8x256xf32>
    tpu.vector_store %arg7[%c0_12, %c0_13, %c0_14], %21 {strides = array<i32>} : memref<1x8x256xf32, #tpu.memory_space<vmem>>, vector<1x8x256xf32>,
    return
  }
  func.func @transform_0(%arg0: i32, %arg1: i32) -> (i32, i32, i32) {
    %c0_i32 = arith.constant 0 : i32
    %c0_i32_0 = arith.constant 0 : i32
    return %arg0, %c0_i32, %arg1 : i32, i32, i32
  }
  func.func @transform_1(%arg0: i32, %arg1: i32) -> (i32, i32) {
    %c0_i32 = arith.constant 0 : i32
    %c0_i32_0 = arith.constant 0 : i32
    %c0_i32_1 = arith.constant 0 : i32
    return %c0_i32, %c0_i32_0 : i32, i32
  }
  func.func @transform_2(%arg0: i32, %arg1: i32) -> (i32, i32) {
    %c0_i32 = arith.constant 0 : i32
    %c0_i32_0 = arith.constant 0 : i32
    %c0_i32_1 = arith.constant 0 : i32
    return %c0_i32, %c0_i32_0 : i32, i32
  }
  func.func @transform_3(%arg0: i32, %arg1: i32) -> (i32, i32) {
    %c0_i32 = arith.constant 0 : i32
    %c0_i32_0 = arith.constant 0 : i32
    %c0_i32_1 = arith.constant 0 : i32
    return %c0_i32, %c0_i32_0 : i32, i32
  }
  func.func @transform_4(%arg0: i32, %arg1: i32) -> (i32, i32) {
    %c0_i32 = arith.constant 0 : i32
    %c0_i32_0 = arith.constant 0 : i32
    %c0_i32_1 = arith.constant 0 : i32
    return %c0_i32, %c0_i32_0 : i32, i32
  }
  func.func @transform_5(%arg0: i32, %arg1: i32) -> (i32, i32, i32) {
    %c0_i32 = arith.constant 0 : i32
    %c0_i32_0 = arith.constant 0 : i32
    return %arg0, %c0_i32, %arg1 : i32, i32, i32
  }
}

</mosaic_0001>

<bundles_post_ra>
// kernel: res_conv2d_block.1
= control target key start
LH: loop header
LB: loop body
LE: loop exit
PB: predicated region body
PF: predicated region fallthrough
CT: control target
= control target key end

     0   :  { %s641_s18 = smov 0   ;;  %s643_s19 = smov 0   ;;  %s705_s0 = inlined_call_operand.vmem [shape: f32[2,4,256], index: 0, kind: input, shape index: {}]   ;;  %s706_s1 = inlined_call_operand.vmem [shape: bf16[40,4], index: 1, kind: input, shape index: {}]   ;;  %s707_s2 = inlined_call_operand.vmem [shape: f32[32,1], index: 2, kind: input, shape index: {}]   ;;  %s708_s3 = inlined_call_operand.vmem [shape: bf16[8,32], index: 3, kind: input, shape index: {}]   ;;  %s709_s4 = inlined_call_operand.vmem [shape: f32[8,1], index: 4, kind: input, shape index: {}]   ;;  %s710_s5 = inlined_call_operand.vmem [shape: f32[2,8,256], index: 5, kind: output, shape index: {}]  }
   0x1   :  { %s645_s20 = smov 0  }
   0x2 LB: > { %s27_s21 = sadd.s32 1, %s604_s19  ;;  %p531_p0 = scmp.ge.s32.totalorder %s608_s20, 1  ;;  %s608_s20 = sphi %s645_s20, %s15_s20   ;;  %s604_s19 = sphi %s643_s19, %s712_s19   ;;  %s600_s18 = sphi %s641_s18, %s711_s18  }
   0x3   : > { %p29_p1 = scmp.ge.s32.totalorder %s27_s21, 2  ;;  %p208_p2 = scmp.lt.s32.totalorder %s608_s20, 3 }
   0x5   : > { %s714_s21 = smov (%p29_p1, %s27_s21), 0  ;;  %p209_p3 = pnand %p531_p0, %p208_p2 }
   0x6   : > { %p245_p4 = scmp.lt.s32.totalorder (!%p209_p3), %s600_s18, 1 }
   0x7   : > { %212 = sbr.rel (%p209_p3) target bundleno = 333 (0x14d), region = 40 }
   0xc   : > { %v271_v0 = vld [vmem:[%s707_s2] sm:$0xff]  ;;  %v610_v1 = vmov 0   ;;  %s716_s18 = smov (!%p245_p4, %s600_s18), 1  ;;  %v273_v2 = vld [vmem:[%s707_s2 + $0x10] sm:$0xff]  ;;  %v272_v4 = vld [vmem:[%s707_s2 + $0x8] sm:$0xff]  ;;  %vm308_vm0 = vcmask 1041408  }
   0xd   : > { %584 = vset.pattern.permute.xlu1 %v610_v1  ;;  %583 = vset.pattern.permute.xlu0 %v610_v1  ;;  %s554_s24 = sshll.u32 %s716_s18, 3  ;;  %v274_v5 = vld [vmem:[%s707_s2 + $0x18] sm:$0xff]  ;;  %v556_v12 = vld [vmem:[%s706_s1] sm:$0xff]  ;;  %vm298_vm1 = vcmask 31744   ;;  %v557_v13 = vld [vmem:[%s706_s1 + $0x8] sm:$0xff]  ;;  %vm401_vm2 = vcmask 261120  }
   0xe   : > { %363 = vperm.xlu1 %584, %v271_v0   ;;  %585 = vset.pattern.permute.xlu2 %v610_v1  ;;  %s252_s27 = scalar_lea.vmem %s705_s0, %s554_s24  ;;  %v269_v14 = vld [vmem:[%s706_s1 + $0x10] sm:$0xf]  ;;  %v275_v19 = vld [vmem:[%s709_s4] sm:$0xff]  ;;  %s555_s23 = sshll.u32 %s716_s18, 4 }
   0xf   : > { %v276_v3 = vld [vmem:[%s252_s27] sm:$0xff]  ;;  %373 = vperm.xlu0 %583, %v273_v2   ;;  %v294_v17 = vunpack.c.l.b16 %v269_v14  ;;  %433 = vperm.xlu2 %585, %v275_v19   ;;  %s262_s26 = scalar_lea.vmem %s710_s5, %s555_s23 }
  0x10   : > { %278 = vst [vmem:[#allocation1] ss:$2 sm:$0xff] %v276_v3  ;;  %v270_v50 = vld [vmem:[%s708_s3] sm:$0xf] }
  0x11   : > { %v297_v18 = vpack.c.b16 %v294_v17, %v294_v17 }
  0x16   : > { %368 = vperm.xlu1 %584, %v272_v4  }
  0x17   : > { %v279_v6 = vld.sshfl [vmem:[#allocation1] sm:$0xff pattern:$0x75316420]  ;;  %v280_v7 = vld.sshfl [vmem:[#allocation1 + $0x8] sm:$0xff pattern:$0x75316420]  ;;  %378 = vperm.xlu0 %583, %v274_v5  }
  0x18   : > { %v283_v8 = vpack.c.bf16 %v279_v6, %v279_v6  ;;  %v284_v9 = vpack.c.bf16 %v280_v7, %v280_v7 }
  0x1a   : > { %v310_v10 = vsel %vm308_vm0, %v283_v8, 0  ;;  %v313_v11 = vsel %vm308_vm0, %v284_v9, 0 }
  0x1b   : > { %322 = vmatpush.bf16.msra.mxu0 %v310_v10  ;;  %345 = vmatpush.bf16.msra.mxu1 %v313_v11 }
  0x1e   : > { %544 = vmatmul.msk.bf16.vlgmr.msra.gmra.mxu0 %vm298_vm1, %v556_v12  ;;  %547 = vmatmul.msk.bf16.vlgmr.msra.gmra.mxu1 %vm298_vm1, %v556_v12 }
  0x2e   : > { %545 = vmatmul.msk.bf16.gmra.mxu0 %vm298_vm1, %v557_v13  ;;  %548 = vmatmul.msk.bf16.gmra.mxu1 %vm298_vm1, %v557_v13 }
  0x3e   : > { %546 = vmatmul.msk.bf16.gmra.mxu0 %vm298_vm1, %v297_v18  ;;  %549 = vmatmul.msk.bf16.gmra.mxu1 %vm298_vm1, %v297_v18 }
  0x69   : > { %v434_v55 = vpop.permute.xlu2 %433 }
  0x80   : > { %v364_v22 = vpop.permute.xlu1 %363 }
  0x81   : > { %v374_v23 = vpop.permute.xlu0 %373 }
  0x88   : > { %v369_v26 = vpop.permute.xlu1 %368 }
  0x89   : > { %v379_v27 = vpop.permute.xlu0 %378 }
  0x9b   : > { %v324_v15 = vpop.f32.mrf.mxu0  ;;  %v347_v16 = vpop.f32.mrf.mxu1 }
  0x9c   : > { %v381_v36 = vadd.f32 %v364_v22, %v324_v15  ;;  %v382_v37 = vadd.f32 %v364_v22, %v347_v16 }
  0x9e   : > { %v389_v46 = vmax.f32 %v381_v36, 0.0  ;;  %v390_v47 = vmax.f32 %v382_v37, 0.0 }
  0xa3   : > { %v326_v20 = vpop.f32.mrf.mxu0  ;;  %v349_v21 = vpop.f32.mrf.mxu1 }
  0xa4   : > { %v383_v32 = vadd.f32 %v369_v26, %v326_v20  ;;  %v384_v33 = vadd.f32 %v369_v26, %v349_v21 }
  0xa6   : > { %v391_v42 = vmax.f32 %v383_v32, 0.0  ;;  %v392_v43 = vmax.f32 %v384_v33, 0.0 }
  0xa8   : > { %v397_v48 = vpack.c.bf16 %v391_v42, %v389_v46  ;;  %v398_v49 = vpack.c.bf16 %v392_v43, %v390_v47 }
  0xab   : > { %v329_v24 = vpop.f32.mrf.mxu0  ;;  %v352_v25 = vpop.f32.mrf.mxu1 }
  0xac   : > { %v385_v28 = vadd.f32 %v374_v23, %v329_v24  ;;  %v386_v29 = vadd.f32 %v374_v23, %v352_v25 }
  0xae   : > { %v393_v38 = vmax.f32 %v385_v28, 0.0  ;;  %v394_v39 = vmax.f32 %v386_v29, 0.0 }
  0xb3   : > { %v331_v30 = vpop.f32.mrf.mxu0  ;;  %v354_v31 = vpop.f32.mrf.mxu1 }
  0xb4   : > { %v387_v34 = vadd.f32 %v379_v27, %v331_v30  ;;  %v388_v35 = vadd.f32 %v379_v27, %v354_v31 }
  0xb6   : > { %v395_v40 = vmax.f32 %v387_v34, 0.0  ;;  %v396_v41 = vmax.f32 %v388_v35, 0.0 }
  0xb8   : > { %v399_v44 = vpack.c.bf16 %v395_v40, %v393_v38  ;;  %v400_v45 = vpack.c.bf16 %v396_v41, %v394_v39 }
  0xba   : > { %411 = vmatpush.bf16.msra.mxu2 %v399_v44  ;;  %424 = vmatpush.bf16.msra.mxu3 %v400_v45 }
  0xbb   : > { %v334_v51 = vpop.f32.mrf.mxu0  ;;  %v357_v52 = vpop.f32.mrf.mxu1 }
  0xbe   : > { %412 = vmatpush.bf16.msra.mxu2 %v397_v48  ;;  %425 = vmatpush.bf16.msra.mxu3 %v398_v49 }
  0xc1   : > { %550 = vmatmul.msk.bf16.vlgmr.msra.gmra.mxu2 %vm401_vm2, %v270_v50  ;;  %551 = vmatmul.msk.bf16.vlgmr.msra.gmra.mxu3 %vm401_vm2, %v270_v50 }
  0xc3   : > { %v336_v53 = vpop.f32.mrf.mxu0  ;;  %v359_v54 = vpop.f32.mrf.mxu1 }
 0x144   : > { %v414_v56 = vpop.f32.mrf.mxu2  ;;  %v427_v57 = vpop.f32.mrf.mxu3 }
 0x145   : > { %v415_v58 = vadd.f32 %v414_v56, %v334_v51  ;;  %v428_v59 = vadd.f32 %v427_v57, %v357_v52 }
 0x147   : > { %v436_v60 = vadd.f32 %v434_v55, %v415_v58  ;;  %v437_v61 = vadd.f32 %v434_v55, %v428_v59 }
 0x149   : > { %438 = vst [vmem:[%s262_s26] sm:$0xff] %v436_v60 }
 0x14a   : > { %439 = vst [vmem:[%s262_s26 + $0x8] sm:$0xff] %v437_v61 }
 0x14c   : > { %v416_v62 = vpop.f32.mrf.mxu2  ;;  %v429_v63 = vpop.f32.mrf.mxu3 }
 0x14d PF: > { %s15_s20 = sadd.s32 1, %s608_s20   ;;  %s711_s18 = smov %s604_s19 }
 0x14e   : > { %p12_p5 = scmp.ge.s32.totalorder %s15_s20, 4   ;;  %s712_s19 = smov %s714_s21 }
 0x150   :  { %14 = sbr.rel (!%p12_p5) target bundleno = 2 (0x2), region = 70 }

</bundles_post_ra>
